<compile_context>
chip_gen: v5e
topology: v5e:2x2
jax: 0.10.0
libtpu: 0.0.40
codegen_flags: <defaults>
</compile_context>

<pallas_src>
import functools

import jax
import jax.numpy as jnp
from jax.experimental import pallas as pl
from jax.experimental.pallas import tpu as pltpu


def _vae_kernel(
    vl_ref,            # (bt, 1, 1) int32 valid lens
    enc_x_ref,         # (bt, Tp, Dp) f32
    dec_x_ref,         # (bt, Tdp, Dp) f32
    eps_ref,           # (bt, Tp, Dp) f32
    w_enc_ref, b_enc_ref,        # (Dp, Dp) bf16, (1, Dp) f32
    w_muvar_ref, b_muvar_ref,    # (Dp, 2*Dp) bf16, (1, 2*Dp) f32
    w_dec_ref, b_dec_ref,        # (Dp, Dp) bf16, (1, Dp) f32
    w_out_ref, b_out_ref,        # (Dp, Dp) bf16, (1, Dp) f32
    dec_out_ref,       # (bt, Tdp, Dp) f32
    mu_ref,            # (bt, Tp, Dp) f32
    logvar_ref,        # (bt, Tp, Dp) f32
):
    bt, T, Dp = enc_x_ref.shape
    Td = dec_x_ref.shape[1]

    def dense(x, w_ref, b_ref):
        # bf16 MXU matmul, f32 accumulation, f32 bias add.
        return jnp.dot(x.astype(jnp.bfloat16), w_ref[...],
                       preferred_element_type=jnp.float32) + b_ref[...]

    # Valid-length mask built in-kernel (full lane width -> unmasked VPU ops).
    vl = vl_ref[...]                                           # (bt, 1, 1)
    pos = jax.lax.broadcasted_iota(jnp.int32, (bt, T, Dp), 1)
    mask = (pos < vl).astype(jnp.float32).reshape(bt * T, Dp)  # per-row mask

    # ---- encoder stand-in: one fused (bt*T, Dp) Linear + ReLU, masked ----
    x = enc_x_ref[...].reshape(bt * T, Dp)
    enc_out = jnp.maximum(dense(x, w_enc_ref, b_enc_ref), 0.0) * mask

    # ---- fc_mu | fc_var fused into a single matmul, then split ----
    muvar = dense(enc_out, w_muvar_ref, b_muvar_ref)           # (bt*T, 2*Dp)
    mu = muvar[:, :Dp]
    logvar = muvar[:, Dp:]

    # ---- reparameterize: z = mu + eps * exp(0.5 * logvar) ----
    z = mu + eps_ref[...].reshape(bt * T, Dp) * jnp.exp(0.5 * logvar)

    # ---- decoder stand-in ----
    # init_state(z, valid_lens): mean-pooled latent context over valid steps.
    cnt = jnp.maximum(jnp.minimum(vl, T), 1).astype(jnp.float32)   # (bt,1,1)
    ctx = jnp.sum((z * mask).reshape(bt, T, Dp), axis=1, keepdims=True) / cnt

    dx = dec_x_ref[...].reshape(bt * Td, Dp)
    dec_h = jnp.maximum(dense(dx, w_dec_ref, b_dec_ref), 0.0)
    dec_in = (dec_h.reshape(bt, Td, Dp) + ctx).reshape(bt * Td, Dp)
    dec_out = dense(dec_in, w_out_ref, b_out_ref)

    dec_out_ref[...] = dec_out.reshape(bt, Td, Dp)
    mu_ref[...] = mu.reshape(bt, T, Dp)
    logvar_ref[...] = logvar.reshape(bt, T, Dp)


def _round_up(x, m):
    return ((x + m - 1) // m) * m


@functools.partial(jax.jit, static_argnames=("batch_tile",))
def vae_encoder_decoder(enc_X, dec_X, enc_valid_lens, eps, params,
                        *, batch_tile=None):
    B, T, D = enc_X.shape
    _, Td, _ = dec_X.shape
    (w_enc, b_enc, w_mu, b_mu, w_var, b_var,
     w_dec, b_dec, w_out, b_out) = params

    # ---- lane/sublane-dense padding (zero-filled, provably inert) ----
    Dp = _round_up(D, 128)
    Tp = _round_up(T, 8)
    Tdp = _round_up(Td, 8)

    def pad_seq(x, rows):
        r, c = rows - x.shape[1], Dp - x.shape[2]
        return jnp.pad(x, ((0, 0), (0, r), (0, c))) if (r or c) else x

    def pad_w(w):
        p = Dp - D
        return jnp.pad(w, ((0, p), (0, p))) if p else w

    def pad_b(b):
        p = Dp - D
        return jnp.pad(b, ((0, 0), (0, p))) if p else b

    enc_Xp = pad_seq(enc_X, Tp)
    dec_Xp = pad_seq(dec_X, Tdp)
    epsp = pad_seq(eps, Tp)

    # Fuse fc_mu | fc_var; cast weights to bf16 (f32 accumulation in-kernel).
    w_encp = pad_w(w_enc).astype(jnp.bfloat16)
    w_muvarp = jnp.concatenate([pad_w(w_mu), pad_w(w_var)],
                               axis=1).astype(jnp.bfloat16)
    b_muvarp = jnp.concatenate([pad_b(b_mu), pad_b(b_var)], axis=1)
    w_decp = pad_w(w_dec).astype(jnp.bfloat16)
    w_outp = pad_w(w_out).astype(jnp.bfloat16)
    b_encp, b_decp, b_outp = pad_b(b_enc), pad_b(b_dec), pad_b(b_out)

    vl = jnp.clip(enc_valid_lens.astype(jnp.int32), 0, T).reshape(B, 1, 1)

    # ---- batch tiling: aim for >= ~256 fused rows per grid step ----
    if batch_tile is None:
        batch_tile = min(B, max(1, 256 // max(Tp, 1)))
    batch_tile = max(1, min(batch_tile, B))
    while B % batch_tile:
        batch_tile -= 1
    bt = batch_tile
    grid = (B // bt,)

    seq_spec = lambda rows: pl.BlockSpec((bt, rows, Dp), lambda g: (g, 0, 0))
    w_spec = lambda cols: pl.BlockSpec((Dp, cols), lambda g: (0, 0))
    b_spec = lambda cols: pl.BlockSpec((1, cols), lambda g: (0, 0))

    grid_spec = pltpu.PrefetchScalarGridSpec(
        num_scalar_prefetch=0,
        grid=grid,
        in_specs=[
            pl.BlockSpec((bt, 1, 1), lambda g: (g, 0, 0)),   # valid lens
            seq_spec(Tp),            # enc_X
            seq_spec(Tdp),           # dec_X
            seq_spec(Tp),            # eps
            w_spec(Dp), b_spec(Dp),          # encoder stand-in
            w_spec(2 * Dp), b_spec(2 * Dp),  # fused fc_mu | fc_var
            w_spec(Dp), b_spec(Dp),          # decoder stand-in layer 1
            w_spec(Dp), b_spec(Dp),          # decoder stand-in layer 2
        ],
        out_specs=[
            seq_spec(Tdp),           # decoder output
            seq_spec(Tp),            # mu
            seq_spec(Tp),            # logvar
        ],
    )

    out_shape = (
        jax.ShapeDtypeStruct((B, Tdp, Dp), jnp.float32),
        jax.ShapeDtypeStruct((B, Tp, Dp), jnp.float32),
        jax.ShapeDtypeStruct((B, Tp, Dp), jnp.float32),
    )

    dec_out, mu, logvar = pl.pallas_call(
        _vae_kernel,
        grid_spec=grid_spec,
        out_shape=out_shape,
        compiler_params=pltpu.CompilerParams(
            dimension_semantics=("parallel",),
            # Tiny for these shapes; re-derive when D/T scale (v7x: 64 MiB).
            vmem_limit_bytes=32 * 1024 * 1024,
        ),
    )(vl, enc_Xp, dec_Xp, epsp,
      w_encp, b_encp, w_muvarp, b_muvarp, w_decp, b_decp, w_outp, b_outp)

    # Strip lane/row padding back to the module's shapes.
    return (dec_out[:, :Td, :D], mu[:, :T, :D], logvar[:, :T, :D])


def _init_params(key, d_model):
    keys = jax.random.split(key, 10)
    scale = 1.0 / jnp.sqrt(d_model)

    def lin(kw, kb):
        w = jax.random.uniform(kw, (d_model, d_model), jnp.float32,
                               -scale, scale)
        b = jax.random.uniform(kb, (1, d_model), jnp.float32, -scale, scale)
        return w, b

    w_enc, b_enc = lin(keys[0], keys[1])
    w_mu, b_mu = lin(keys[2], keys[3])
    w_var, b_var = lin(keys[4], keys[5])
    w_dec, b_dec = lin(keys[6], keys[7])
    w_out, b_out = lin(keys[8], keys[9])
    return (w_enc, b_enc, w_mu, b_mu, w_var, b_var, w_dec, b_dec, w_out, b_out)


if __name__ == "__main__":
    B, T, Td, D = 2, 8, 8, 32

    key = jax.random.PRNGKey(0)
    k_enc, k_dec, k_eps, k_par = jax.random.split(key, 4)

    enc_X = jax.random.normal(k_enc, (B, T, D), jnp.float32)
    dec_X = jax.random.normal(k_dec, (B, Td, D), jnp.float32)
    # eps plays the role of torch.randn_like(std) in reparameterize().
    eps = jax.random.normal(k_eps, (B, T, D), jnp.float32)
    enc_valid_lens = jnp.array([T, T // 2], dtype=jnp.int32)

    params = _init_params(k_par, D)

    dec_out, mu, logvar = vae_encoder_decoder(
        enc_X, dec_X, enc_valid_lens, eps, params)
    jax.block_until_ready((dec_out, mu, logvar))

    assert dec_out.shape == (B, Td, D)
    assert mu.shape == (B, T, D)
    assert logvar.shape == (B, T, D)
    print("KERNEL_OK")
</pallas_src>

<mosaic_0001>
module attributes {stable_mosaic.version = 11 : i64} {
  func.func @_vae_kernel(%arg0: i32, %arg1: memref<2x1x1xi32, #tpu.memory_space<vmem>>, %arg2: memref<2x8x128xf32, #tpu.memory_space<vmem>>, %arg3: memref<2x8x128xf32, #tpu.memory_space<vmem>>, %arg4: memref<2x8x128xf32, #tpu.memory_space<vmem>>, %arg5: memref<128x128xbf16, #tpu.memory_space<vmem>>, %arg6: memref<1x128xf32, #tpu.memory_space<vmem>>, %arg7: memref<128x256xbf16, #tpu.memory_space<vmem>>, %arg8: memref<1x256xf32, #tpu.memory_space<vmem>>, %arg9: memref<128x128xbf16, #tpu.memory_space<vmem>>, %arg10: memref<1x128xf32, #tpu.memory_space<vmem>>, %arg11: memref<128x128xbf16, #tpu.memory_space<vmem>>, %arg12: memref<1x128xf32, #tpu.memory_space<vmem>>, %arg13: memref<2x8x128xf32, #tpu.memory_space<vmem>>, %arg14: memref<2x8x128xf32, #tpu.memory_space<vmem>>, %arg15: memref<2x8x128xf32, #tpu.memory_space<vmem>>) attributes {dimension_semantics = [#tpu.dimension_semantics<parallel>], iteration_bounds = array<i64: 1>, scalar_prefetch = 0 : i64, scratch_operands = 0 : i64, tpu.core_type = #tpu.core_type<tc>, window_params = [{transform_indices = @transform_0, window_bounds = array<i64: 2, 1, 1>}, {transform_indices = @transform_1, window_bounds = array<i64: 2, 8, 128>}, {transform_indices = @transform_2, window_bounds = array<i64: 2, 8, 128>}, {transform_indices = @transform_3, window_bounds = array<i64: 2, 8, 128>}, {pipeline_mode = #tpu.pipeline_mode<synchronous>, transform_indices = @transform_4, window_bounds = array<i64: 128, 128>}, {pipeline_mode = #tpu.pipeline_mode<synchronous>, transform_indices = @transform_5, window_bounds = array<i64: 1, 128>}, {pipeline_mode = #tpu.pipeline_mode<synchronous>, transform_indices = @transform_6, window_bounds = array<i64: 128, 256>}, {pipeline_mode = #tpu.pipeline_mode<synchronous>, transform_indices = @transform_7, window_bounds = array<i64: 1, 256>}, {pipeline_mode = #tpu.pipeline_mode<synchronous>, transform_indices = @transform_8, window_bounds = array<i64: 128, 128>}, {pipeline_mode = #tpu.pipeline_mode<synchronous>, transform_indices = @transform_9, window_bounds = array<i64: 1, 128>}, {pipeline_mode = #tpu.pipeline_mode<synchronous>, transform_indices = @transform_10, window_bounds = array<i64: 128, 128>}, {pipeline_mode = #tpu.pipeline_mode<synchronous>, transform_indices = @transform_11, window_bounds = array<i64: 1, 128>}, {transform_indices = @transform_12, window_bounds = array<i64: 2, 8, 128>}, {transform_indices = @transform_13, window_bounds = array<i64: 2, 8, 128>}, {transform_indices = @transform_14, window_bounds = array<i64: 2, 8, 128>}]} {
    %c0 = arith.constant 0 : index
    %c0_0 = arith.constant 0 : index
    %c0_1 = arith.constant 0 : index
    %0 = vector.load %arg1[%c0, %c0_0, %c0_1] : memref<2x1x1xi32, #tpu.memory_space<vmem>>, vector<2x1x1xi32>
    %1 = tpu.iota {dimensions = array<i32: 1>} : vector<2x8x128xi32>
    %2 = vector.broadcast %0 : vector<2x1x1xi32> to vector<2x8x128xi32>
    %3 = arith.cmpi slt, %1, %2 : vector<2x8x128xi32>
    %4 = arith.extui %3 : vector<2x8x128xi1> to vector<2x8x128xi32>
    %5 = arith.sitofp %4 : vector<2x8x128xi32> to vector<2x8x128xf32>
    %6 = vector.shape_cast %5 : vector<2x8x128xf32> to vector<16x128xf32>
    %c0_2 = arith.constant 0 : index
    %c0_3 = arith.constant 0 : index
    %c0_4 = arith.constant 0 : index
    %7 = vector.load %arg2[%c0_2, %c0_3, %c0_4] : memref<2x8x128xf32, #tpu.memory_space<vmem>>, vector<2x8x128xf32>
    %8 = vector.shape_cast %7 : vector<2x8x128xf32> to vector<16x128xf32>
    %9 = arith.truncf %8 : vector<16x128xf32> to vector<16x128xbf16>
    %c0_5 = arith.constant 0 : index
    %c0_6 = arith.constant 0 : index
    %10 = vector.load %arg5[%c0_5, %c0_6] : memref<128x128xbf16, #tpu.memory_space<vmem>>, vector<128x128xbf16>
    %cst = arith.constant dense<0.000000e+00> : vector<16x128xf32>
    %11 = tpu.matmul %9, %10, %cst {dimension_numbers = #tpu.dot_dimension_numbers<[1], [0], [0], [1], [0, 0, 1, 1], [], []>} : vector<16x128xbf16>, vector<128x128xbf16>, vector<16x128xf32> -> vector<16x128xf32>
    %c0_7 = arith.constant 0 : index
    %c0_8 = arith.constant 0 : index
    %12 = vector.load %arg6[%c0_7, %c0_8] : memref<1x128xf32, #tpu.memory_space<vmem>>, vector<1x128xf32>
    %13 = vector.broadcast %12 : vector<1x128xf32> to vector<16x128xf32>
    %14 = arith.addf %11, %13 : vector<16x128xf32>
    %cst_9 = arith.constant 0.000000e+00 : f32
    %15 = vector.broadcast %cst_9 : f32 to vector<16x128xf32>
    %16 = arith.maximumf %14, %15 : vector<16x128xf32>
    %17 = arith.mulf %16, %6 : vector<16x128xf32>
    %18 = arith.truncf %17 : vector<16x128xf32> to vector<16x128xbf16>
    %c0_10 = arith.constant 0 : index
    %c0_11 = arith.constant 0 : index
    %19 = vector.load %arg7[%c0_10, %c0_11] : memref<128x256xbf16, #tpu.memory_space<vmem>>, vector<128x256xbf16>
    %cst_12 = arith.constant dense<0.000000e+00> : vector<16x256xf32>
    %20 = tpu.matmul %18, %19, %cst_12 {dimension_numbers = #tpu.dot_dimension_numbers<[1], [0], [0], [1], [0, 0, 1, 1], [], []>} : vector<16x128xbf16>, vector<128x256xbf16>, vector<16x256xf32> -> vector<16x256xf32>
    %c0_13 = arith.constant 0 : index
    %c0_14 = arith.constant 0 : index
    %21 = vector.load %arg8[%c0_13, %c0_14] : memref<1x256xf32, #tpu.memory_space<vmem>>, vector<1x256xf32>
    %22 = vector.broadcast %21 : vector<1x256xf32> to vector<16x256xf32>
    %23 = arith.addf %20, %22 : vector<16x256xf32>
    %24 = vector.extract_strided_slice %23 {offsets = [0, 0], sizes = [16, 128], strides = [1, 1]} : vector<16x256xf32> to vector<16x128xf32>
    %25 = vector.extract_strided_slice %23 {offsets = [0, 128], sizes = [16, 128], strides = [1, 1]} : vector<16x256xf32> to vector<16x128xf32>
    %c0_15 = arith.constant 0 : index
    %c0_16 = arith.constant 0 : index
    %c0_17 = arith.constant 0 : index
    %26 = vector.load %arg4[%c0_15, %c0_16, %c0_17] : memref<2x8x128xf32, #tpu.memory_space<vmem>>, vector<2x8x128xf32>
    %27 = vector.shape_cast %26 : vector<2x8x128xf32> to vector<16x128xf32>
    %cst_18 = arith.constant 5.000000e-01 : f32
    %28 = vector.broadcast %cst_18 : f32 to vector<16x128xf32>
    %29 = arith.mulf %28, %25 : vector<16x128xf32>
    %30 = math.exp %29 : vector<16x128xf32>
    %31 = arith.mulf %27, %30 : vector<16x128xf32>
    %32 = arith.addf %24, %31 : vector<16x128xf32>
    %c8_i32 = arith.constant 8 : i32
    %33 = vector.broadcast %c8_i32 : i32 to vector<2x1x1xi32>
    %34 = arith.minsi %0, %33 : vector<2x1x1xi32>
    %c1_i32 = arith.constant 1 : i32
    %35 = vector.broadcast %c1_i32 : i32 to vector<2x1x1xi32>
    %36 = arith.maxsi %34, %35 : vector<2x1x1xi32>
    %37 = arith.sitofp %36 : vector<2x1x1xi32> to vector<2x1x1xf32>
    %38 = arith.mulf %32, %6 : vector<16x128xf32>
    %39 = vector.shape_cast %38 : vector<16x128xf32> to vector<2x8x128xf32>
    %cst_19 = arith.constant dense<0.000000e+00> : vector<2x128xf32>
    %40 = vector.multi_reduction <add>, %39, %cst_19 [1] : vector<2x8x128xf32> to vector<2x128xf32>
    %41 = vector.shape_cast %40 : vector<2x128xf32> to vector<2x1x128xf32>
    %42 = vector.broadcast %37 : vector<2x1x1xf32> to vector<2x1x128xf32>
    %43 = arith.divf %41, %42 : vector<2x1x128xf32>
    %c0_20 = arith.constant 0 : index
    %c0_21 = arith.constant 0 : index
    %c0_22 = arith.constant 0 : index
    %44 = vector.load %arg3[%c0_20, %c0_21, %c0_22] : memref<2x8x128xf32, #tpu.memory_space<vmem>>, vector<2x8x128xf32>
    %45 = vector.shape_cast %44 : vector<2x8x128xf32> to vector<16x128xf32>
    %46 = arith.truncf %45 : vector<16x128xf32> to vector<16x128xbf16>
    %c0_23 = arith.constant 0 : index
    %c0_24 = arith.constant 0 : index
    %47 = vector.load %arg9[%c0_23, %c0_24] : memref<128x128xbf16, #tpu.memory_space<vmem>>, vector<128x128xbf16>
    %cst_25 = arith.constant dense<0.000000e+00> : vector<16x128xf32>
    %48 = tpu.matmul %46, %47, %cst_25 {dimension_numbers = #tpu.dot_dimension_numbers<[1], [0], [0], [1], [0, 0, 1, 1], [], []>} : vector<16x128xbf16>, vector<128x128xbf16>, vector<16x128xf32> -> vector<16x128xf32>
    %c0_26 = arith.constant 0 : index
    %c0_27 = arith.constant 0 : index
    %49 = vector.load %arg10[%c0_26, %c0_27] : memref<1x128xf32, #tpu.memory_space<vmem>>, vector<1x128xf32>
    %50 = vector.broadcast %49 : vector<1x128xf32> to vector<16x128xf32>
    %51 = arith.addf %48, %50 : vector<16x128xf32>
    %cst_28 = arith.constant 0.000000e+00 : f32
    %52 = vector.broadcast %cst_28 : f32 to vector<16x128xf32>
    %53 = arith.maximumf %51, %52 : vector<16x128xf32>
    %54 = vector.shape_cast %53 : vector<16x128xf32> to vector<2x8x128xf32>
    %55 = vector.broadcast %43 : vector<2x1x128xf32> to vector<2x8x128xf32>
    %56 = arith.addf %54, %55 : vector<2x8x128xf32>
    %57 = vector.shape_cast %56 : vector<2x8x128xf32> to vector<16x128xf32>
    %58 = arith.truncf %57 : vector<16x128xf32> to vector<16x128xbf16>
    %c0_29 = arith.constant 0 : index
    %c0_30 = arith.constant 0 : index
    %59 = vector.load %arg11[%c0_29, %c0_30] : memref<128x128xbf16, #tpu.memory_space<vmem>>, vector<128x128xbf16>
    %cst_31 = arith.constant dense<0.000000e+00> : vector<16x128xf32>
    %60 = tpu.matmul %58, %59, %cst_31 {dimension_numbers = #tpu.dot_dimension_numbers<[1], [0], [0], [1], [0, 0, 1, 1], [], []>} : vector<16x128xbf16>, vector<128x128xbf16>, vector<16x128xf32> -> vector<16x128xf32>
    %c0_32 = arith.constant 0 : index
    %c0_33 = arith.constant 0 : index
    %61 = vector.load %arg12[%c0_32, %c0_33] : memref<1x128xf32, #tpu.memory_space<vmem>>, vector<1x128xf32>
    %62 = vector.broadcast %61 : vector<1x128xf32> to vector<16x128xf32>
    %63 = arith.addf %60, %62 : vector<16x128xf32>
    %64 = vector.shape_cast %63 : vector<16x128xf32> to vector<2x8x128xf32>
    %c0_34 = arith.constant 0 : index
    %c0_35 = arith.constant 0 : index
    %c0_36 = arith.constant 0 : index
    %65 = vector.load %arg13[%c0_34, %c0_35, %c0_36] : memref<2x8x128xf32, #tpu.memory_space<vmem>>, vector<2x8x128xf32>
    tpu.vector_store %arg13[%c0_34, %c0_35, %c0_36], %64 {strides = array<i32>} : memref<2x8x128xf32, #tpu.memory_space<vmem>>, vector<2x8x128xf32>,
    %66 = vector.shape_cast %24 : vector<16x128xf32> to vector<2x8x128xf32>
    %c0_37 = arith.constant 0 : index
    %c0_38 = arith.constant 0 : index
    %c0_39 = arith.constant 0 : index
    %67 = vector.load %arg14[%c0_37, %c0_38, %c0_39] : memref<2x8x128xf32, #tpu.memory_space<vmem>>, vector<2x8x128xf32>
    tpu.vector_store %arg14[%c0_37, %c0_38, %c0_39], %66 {strides = array<i32>} : memref<2x8x128xf32, #tpu.memory_space<vmem>>, vector<2x8x128xf32>,
    %68 = vector.shape_cast %25 : vector<16x128xf32> to vector<2x8x128xf32>
    %c0_40 = arith.constant 0 : index
    %c0_41 = arith.constant 0 : index
    %c0_42 = arith.constant 0 : index
    %69 = vector.load %arg15[%c0_40, %c0_41, %c0_42] : memref<2x8x128xf32, #tpu.memory_space<vmem>>, vector<2x8x128xf32>
    tpu.vector_store %arg15[%c0_40, %c0_41, %c0_42], %68 {strides = array<i32>} : memref<2x8x128xf32, #tpu.memory_space<vmem>>, vector<2x8x128xf32>,
    return
  }
  func.func @transform_0(%arg0: i32) -> (i32, i32, i32) {
    %c0_i32 = arith.constant 0 : i32
    %c0_i32_0 = arith.constant 0 : i32
    %c0_i32_1 = arith.constant 0 : i32
    return %arg0, %c0_i32, %c0_i32_0 : i32, i32, i32
  }
  func.func @transform_1(%arg0: i32) -> (i32, i32, i32) {
    %c0_i32 = arith.constant 0 : i32
    %c0_i32_0 = arith.constant 0 : i32
    %c0_i32_1 = arith.constant 0 : i32
    return %arg0, %c0_i32, %c0_i32_0 : i32, i32, i32
  }
  func.func @transform_2(%arg0: i32) -> (i32, i32, i32) {
    %c0_i32 = arith.constant 0 : i32
    %c0_i32_0 = arith.constant 0 : i32
    %c0_i32_1 = arith.constant 0 : i32
    return %arg0, %c0_i32, %c0_i32_0 : i32, i32, i32
  }
  func.func @transform_3(%arg0: i32) -> (i32, i32, i32) {
    %c0_i32 = arith.constant 0 : i32
    %c0_i32_0 = arith.constant 0 : i32
    %c0_i32_1 = arith.constant 0 : i32
    return %arg0, %c0_i32, %c0_i32_0 : i32, i32, i32
  }
  func.func @transform_4(%arg0: i32) -> (i32, i32) {
    %c0_i32 = arith.constant 0 : i32
    %c0_i32_0 = arith.constant 0 : i32
    %c0_i32_1 = arith.constant 0 : i32
    return %c0_i32, %c0_i32_0 : i32, i32
  }
  func.func @transform_5(%arg0: i32) -> (i32, i32) {
    %c0_i32 = arith.constant 0 : i32
    %c0_i32_0 = arith.constant 0 : i32
    %c0_i32_1 = arith.constant 0 : i32
    return %c0_i32, %c0_i32_0 : i32, i32
  }
  func.func @transform_6(%arg0: i32) -> (i32, i32) {
    %c0_i32 = arith.constant 0 : i32
    %c0_i32_0 = arith.constant 0 : i32
    %c0_i32_1 = arith.constant 0 : i32
    return %c0_i32, %c0_i32_0 : i32, i32
  }
  func.func @transform_7(%arg0: i32) -> (i32, i32) {
    %c0_i32 = arith.constant 0 : i32
    %c0_i32_0 = arith.constant 0 : i32
    %c0_i32_1 = arith.constant 0 : i32
    return %c0_i32, %c0_i32_0 : i32, i32
  }
  func.func @transform_8(%arg0: i32) -> (i32, i32) {
    %c0_i32 = arith.constant 0 : i32
    %c0_i32_0 = arith.constant 0 : i32
    %c0_i32_1 = arith.constant 0 : i32
    return %c0_i32, %c0_i32_0 : i32, i32
  }
  func.func @transform_9(%arg0: i32) -> (i32, i32) {
    %c0_i32 = arith.constant 0 : i32
    %c0_i32_0 = arith.constant 0 : i32
    %c0_i32_1 = arith.constant 0 : i32
    return %c0_i32, %c0_i32_0 : i32, i32
  }
  func.func @transform_10(%arg0: i32) -> (i32, i32) {
    %c0_i32 = arith.constant 0 : i32
    %c0_i32_0 = arith.constant 0 : i32
    %c0_i32_1 = arith.constant 0 : i32
    return %c0_i32, %c0_i32_0 : i32, i32
  }
  func.func @transform_11(%arg0: i32) -> (i32, i32) {
    %c0_i32 = arith.constant 0 : i32
    %c0_i32_0 = arith.constant 0 : i32
    %c0_i32_1 = arith.constant 0 : i32
    return %c0_i32, %c0_i32_0 : i32, i32
  }
  func.func @transform_12(%arg0: i32) -> (i32, i32, i32) {
    %c0_i32 = arith.constant 0 : i32
    %c0_i32_0 = arith.constant 0 : i32
    %c0_i32_1 = arith.constant 0 : i32
    return %arg0, %c0_i32, %c0_i32_0 : i32, i32, i32
  }
  func.func @transform_13(%arg0: i32) -> (i32, i32, i32) {
    %c0_i32 = arith.constant 0 : i32
    %c0_i32_0 = arith.constant 0 : i32
    %c0_i32_1 = arith.constant 0 : i32
    return %arg0, %c0_i32, %c0_i32_0 : i32, i32, i32
  }
  func.func @transform_14(%arg0: i32) -> (i32, i32, i32) {
    %c0_i32 = arith.constant 0 : i32
    %c0_i32_0 = arith.constant 0 : i32
    %c0_i32_1 = arith.constant 0 : i32
    return %arg0, %c0_i32, %c0_i32_0 : i32, i32, i32
  }
}

</mosaic_0001>

<bundles_post_ra>
// kernel: vae_encoder_decoder.1
= control target key start
LH: loop header
LB: loop body
LE: loop exit
PB: predicated region body
PF: predicated region fallthrough
CT: control target
= control target key end

     0   :  { %20 = vsyncpa [#allocation3], 0  ;;  %v893_v2 = vmov 0   ;;  %s1217_s0 = inlined_call_operand.vmem [shape: s32[2,1,1], index: 0, kind: input, shape index: {}]   ;;  %s1218_s1 = inlined_call_operand.vmem [shape: f32[2,8,128], index: 1, kind: input, shape index: {}]   ;;  %s1219_s2 = inlined_call_operand.vmem [shape: f32[2,8,128], index: 2, kind: input, shape index: {}]   ;;  %s1220_s3 = inlined_call_operand.vmem [shape: f32[2,8,128], index: 3, kind: input, shape index: {}]   ;;  %s1221_s4 = inlined_call_operand.vmem [shape: bf16[128,128], index: 4, kind: input, shape index: {}]   ;;  %s1222_s5 = inlined_call_operand.vmem [shape: f32[1,128], index: 5, kind: input, shape index: {}]   ;;  %s1223_s6 = inlined_call_operand.vmem [shape: bf16[128,256], index: 6, kind: input, shape index: {}]   ;;  %s1224_s7 = inlined_call_operand.vmem [shape: f32[1,256], index: 7, kind: input, shape index: {}]   ;;  %s1225_s8 = inlined_call_operand.vmem [shape: bf16[128,128], index: 8, kind: input, shape index: {}]   ;;  %s1226_s9 = inlined_call_operand.vmem [shape: f32[1,128], index: 9, kind: input, shape index: {}]   ;;  %s1227_s10 = inlined_call_operand.vmem [shape: bf16[128,128], index: 10, kind: input, shape index: {}]   ;;  %s1228_s11 = inlined_call_operand.vmem [shape: f32[1,128], index: 11, kind: input, shape index: {}]   ;;  %s1229_s12 = inlined_call_operand.hbm [shape: f32[2,8,128], index: 12, kind: output, shape index: {0}]   ;;  %s1230_s13 = inlined_call_operand.hbm [shape: f32[2,8,128], index: 13, kind: output, shape index: {1}]   ;;  %s1231_s14 = inlined_call_operand.hbm [shape: f32[2,8,128], index: 14, kind: output, shape index: {2}]  }
   0x1   :  { %v762_v0 = vld [vmem:[%s1221_s4 + $0x38] sm:$0xff]  ;;  %v761_v1 = vld [vmem:[%s1221_s4 + $0x30] sm:$0xff]  ;;  %802 = vset.pattern.permute.xlu0 %v893_v2  ;;  %v804_v3 = vld [vmem:[%s1217_s0] ss:$0 sm:$0xff]  ;;  %803 = vset.pattern.permute.xlu1 %v893_v2 }
   0x2   :  { %135 = vmatpush.bf16.msra.mxu0 %v762_v0  ;;  %v760_v4 = vld [vmem:[%s1221_s4 + $0x28] sm:$0xff]  ;;  %v685_v5 = vld [vmem:[%s1223_s6 + $0x70] sm:$0xf]  ;;  %53 = vperm.xlu0 %802, %v804_v3   ;;  %v778_v6 = vld [vmem:[%s1223_s6 + $0x74] sm:$0xf0] }
   0x3   :  { %v777_v7 = vld [vmem:[%s1223_s6 + $0x74] sm:$0xf]  ;;  %v687_v8 = vld [vmem:[%s1223_s6 + $0x78] sm:$0xf0]  ;;  %v686_v9 = vor.u32 %v778_v6, %v685_v5  ;;  %v677_v11 = vld [vmem:[%s1223_s6 + $0x60] sm:$0xf] }
   0x4   :  { %v690_v10 = vor.u32 %v777_v7, %v687_v8  ;;  %v776_v12 = vld [vmem:[%s1223_s6 + $0x64] sm:$0xf0]  ;;  %v775_v13 = vld [vmem:[%s1223_s6 + $0x64] sm:$0xf]  ;;  %v805_v14 = vld [vmem:[%s1217_s0 + $0x1] ss:$0 sm:$0xff] }
   0x5   :  { %v679_v15 = vld [vmem:[%s1223_s6 + $0x68] sm:$0xf0]  ;;  %v669_v16 = vld [vmem:[%s1223_s6 + $0x50] sm:$0xf]  ;;  %v774_v17 = vld [vmem:[%s1223_s6 + $0x54] sm:$0xf0]  ;;  %256 = vmatpush.bf16.msra.mxu1 %v686_v9  ;;  %v678_v18 = vor.u32 %v776_v12, %v677_v11 }
   0x6   :  { %136 = vmatpush.bf16.msra.mxu0 %v761_v1  ;;  %270 = vmatpush.bf16.msra.mxu2 %v690_v10  ;;  %v682_v19 = vor.u32 %v775_v13, %v679_v15  ;;  %v773_v20 = vld [vmem:[%s1223_s6 + $0x54] sm:$0xf]  ;;  %v671_v21 = vld [vmem:[%s1223_s6 + $0x58] sm:$0xf0] }
   0x7   :  { %21 = vsyncpa [#allocation5], 0  ;;  %v759_v22 = vld [vmem:[%s1221_s4 + $0x20] sm:$0xff]  ;;  %v670_v23 = vor.u32 %v774_v17, %v669_v16  ;;  %v674_v24 = vor.u32 %v773_v20, %v671_v21  ;;  %v758_v25 = vld [vmem:[%s1221_s4 + $0x18] sm:$0xff]  ;;  %s897_s21 = smov 8   ;;  %s898_s22 = smov [#allocation6]  }
   0x8   :  { %v757_v26 = vld [vmem:[%s1221_s4 + $0x10] sm:$0xff]  ;;  %v756_v27 = vld [vmem:[%s1221_s4 + $0x8] sm:$0xff]  ;;  %v755_v28 = vld [vmem:[%s1221_s4] sm:$0xff]  ;;  %s570_s23 = sshll.u32 %s898_s22, 4  ;;  %s572_s26 = sshll.u32 %s1231_s14, 4  ;;  %s571_s23 = int_to_ptr.vmem [resolvable:$true] %s570_s23  ;;  %s573_s26 = int_to_ptr.hbm [resolvable:$true] %s572_s26 }
   0x9   :  { %257 = vmatpush.bf16.msra.mxu1 %v678_v18  ;;  %v64_v29 = vld [vmem:[%s1218_s1] sm:$0xff]  ;;  %v65_v30 = vld [vmem:[%s1218_s1 + $0x8] sm:$0xff]  ;;  %v653_v38 = vld [vmem:[%s1223_s6 + $0x30] sm:$0xf]  ;;  %s546_s29 = sshll.u32 %s1229_s12, 4  ;;  %s547_s29 = int_to_ptr.hbm [resolvable:$true] %s546_s29 }
   0xa   :  { %137 = vmatpush.bf16.msra.mxu0 %v760_v4  ;;  %271 = vmatpush.bf16.msra.mxu2 %v682_v19  ;;  %v66_v31 = vpack.c.bf16 %v65_v30, %v64_v29  ;;  %v661_v32 = vld [vmem:[%s1223_s6 + $0x40] sm:$0xf]  ;;  %v772_v33 = vld [vmem:[%s1223_s6 + $0x44] sm:$0xf0]  ;;  %v771_v34 = vld [vmem:[%s1223_s6 + $0x44] sm:$0xf] }
   0xb   :  { %56 = vperm.xlu0 %802, %v805_v14   ;;  %v662_v35 = vor.u32 %v772_v33, %v661_v32  ;;  %v663_v36 = vld [vmem:[%s1223_s6 + $0x48] sm:$0xf0]  ;;  %v770_v39 = vld [vmem:[%s1223_s6 + $0x34] sm:$0xf0]  ;;  %v769_v40 = vld [vmem:[%s1223_s6 + $0x34] sm:$0xf]  ;;  %v48_v14 = vlaneseq }
   0xc   :  { %v666_v37 = vor.u32 %v771_v34, %v663_v36  ;;  %v654_v41 = vor.u32 %v770_v39, %v653_v38  ;;  %v655_v42 = vld [vmem:[%s1223_s6 + $0x38] sm:$0xf0]  ;;  %v645_v44 = vld [vmem:[%s1223_s6 + $0x20] sm:$0xf]  ;;  %v768_v45 = vld [vmem:[%s1223_s6 + $0x24] sm:$0xf0] }
   0xd   :  { %258 = vmatpush.bf16.msra.mxu1 %v670_v23  ;;  %v658_v43 = vor.u32 %v769_v40, %v655_v42  ;;  %v767_v46 = vld [vmem:[%s1223_s6 + $0x24] sm:$0xf]  ;;  %v646_v47 = vor.u32 %v768_v45, %v645_v44  ;;  %v647_v48 = vld [vmem:[%s1223_s6 + $0x28] sm:$0xf0]  ;;  %v786_v50 = vld [vmem:[%s1225_s8 + $0x38] sm:$0xff]  ;;  %v49_v21 = vshrl.u32 %v48_v14, 7 }
   0xe   :  { %138 = vmatpush.bf16.msra.mxu0 %v759_v22  ;;  %272 = vmatpush.bf16.msra.mxu2 %v674_v24  ;;  %v650_v49 = vor.u32 %v767_v46, %v647_v48  ;;  %v637_v51 = vld [vmem:[%s1223_s6 + $0x10] sm:$0xf]  ;;  %v766_v52 = vld [vmem:[%s1223_s6 + $0x14] sm:$0xf0]  ;;  %v765_v53 = vld [vmem:[%s1223_s6 + $0x14] sm:$0xf] }
   0xf   :  { %433 = vmatpush.bf16.msra.mxu3 %v786_v50  ;;  %v638_v54 = vor.u32 %v766_v52, %v637_v51  ;;  %v639_v55 = vld [vmem:[%s1223_s6 + $0x18] sm:$0xf0]  ;;  %v785_v57 = vld [vmem:[%s1225_s8 + $0x30] sm:$0xff]  ;;  %v629_v58 = vld [vmem:[%s1223_s6] sm:$0xf] }
  0x10   :  { %v642_v56 = vor.u32 %v765_v53, %v639_v55  ;;  %v764_v59 = vld [vmem:[%s1223_s6 + $0x4] sm:$0xf0]  ;;  %v763_v60 = vld [vmem:[%s1223_s6 + $0x4] sm:$0xf]  ;;  %v631_v62 = vld [vmem:[%s1223_s6 + $0x8] sm:$0xf0] }
  0x11   :  { %259 = vmatpush.bf16.msra.mxu1 %v662_v35  ;;  %v630_v61 = vor.u32 %v764_v59, %v629_v58  ;;  %v634_v63 = vor.u32 %v763_v60, %v631_v62  ;;  %v784_v0 = vld [vmem:[%s1225_s8 + $0x28] sm:$0xff]  ;;  %v46_v1 = vld [vmem:[%s1217_s0] sm:$0x1]  ;;  %v47_v2 = vld [vmem:[%s1217_s0 + $0x1] sm:$0x1] }
  0x12   :  { %139 = vmatpush.bf16.msra.mxu0 %v758_v25  ;;  %273 = vmatpush.bf16.msra.mxu2 %v666_v37  ;;  %v783_v3 = vld [vmem:[%s1225_s8 + $0x20] sm:$0xff]  ;;  %vm296_vm0 = vcmp.lt.s32.totalorder %v46_v1, 8  ;;  %vm298_vm1 = vcmp.lt.s32.totalorder %v47_v2, 8  ;;  %v782_v6 = vld [vmem:[%s1225_s8 + $0x18] sm:$0xff]  ;;  %v781_v9 = vld [vmem:[%s1225_s8 + $0x10] sm:$0xff] }
  0x13   :  { %434 = vmatpush.bf16.msra.mxu3 %v785_v57  ;;  %v297_v4 = vsel %vm296_vm0, %v46_v1, 8  ;;  %v299_v5 = vsel %vm298_vm1, %v47_v2, 8  ;;  %v780_v11 = vld [vmem:[%s1225_s8 + $0x8] sm:$0xff]  ;;  %v779_v15 = vld [vmem:[%s1225_s8] sm:$0xff]  ;;  %v794_v34 = vld [vmem:[%s1227_s10 + $0x38] sm:$0xff]  ;;  %s896_s8 = smov 128  }
  0x14   :  { %vm300_vm2 = vcmp.gt.s32.totalorder %v297_v4, 1  ;;  %vm302_vm3 = vcmp.gt.s32.totalorder %v299_v5, 1  ;;  %v362_v16 = vld [vmem:[%s1219_s2] sm:$0xff]  ;;  %v363_v17 = vld [vmem:[%s1219_s2 + $0x8] sm:$0xff]  ;;  %v793_v35 = vld [vmem:[%s1227_s10 + $0x30] sm:$0xff] }
  0x15   :  { %260 = vmatpush.bf16.msra.mxu1 %v654_v41  ;;  %v301_v7 = vsel %vm300_vm2, %v297_v4, 1  ;;  %v303_v10 = vsel %vm302_vm3, %v299_v5, 1  ;;  %v806_v19 = vld [vmem:[%s1222_s5] ss:$0 sm:$0xff]  ;;  %v364_v20 = vpack.c.bf16 %v363_v17, %v362_v16  ;;  %v792_v37 = vld [vmem:[%s1227_s10 + $0x28] sm:$0xff]  ;;  %v790_v44 = vld [vmem:[%s1227_s10 + $0x18] sm:$0xff] }
  0x16   :  { %140 = vmatpush.bf16.msra.mxu0 %v757_v26  ;;  %274 = vmatpush.bf16.msra.mxu2 %v658_v43  ;;  %v304_v8 = vcvt.s32.f32 %v301_v7  ;;  %v305_v12 = vcvt.s32.f32 %v303_v10  ;;  %v170_v36 = vld [vmem:[%s1224_s7] sm:$0x3]  ;;  %v285_v5 = vld [vmem:[%s1220_s3 + $0x8] sm:$0xff]  ;;  %s559_s5 = sshll.u32 %s1230_s13, 4  ;;  %s899_s13 = smov [#allocation2]   ;;  %s560_s5 = int_to_ptr.hbm [resolvable:$true] %s559_s5 }
  0x17   :  { %435 = vmatpush.bf16.msra.mxu3 %v784_v0  ;;  %v172_v38 = vperm.slane %v170_v36, 0  ;;  %v791_v39 = vld [vmem:[%s1227_s10 + $0x20] sm:$0xff]  ;;  %v173_v43 = vperm.slane %v170_v36, 1  ;;  %s544_s0 = sshll.u32 %s899_s13, 4  ;;  %s545_s0 = int_to_ptr.vmem [resolvable:$true] %s544_s0 }
  0x18   :  { %322 = vperm.xlu1 %803, %v304_v8   ;;  %v787_v58 = vld [vmem:[%s1227_s10] sm:$0xff] }
  0x19   :  { %261 = vmatpush.bf16.msra.mxu1 %v646_v47  ;;  %v789_v47 = vld [vmem:[%s1227_s10 + $0x10] sm:$0xff]  ;;  %v284_v59 = vld [vmem:[%s1220_s3] sm:$0xff] }
  0x1a   :  { %141 = vmatpush.bf16.msra.mxu0 %v756_v27  ;;  %275 = vmatpush.bf16.msra.mxu2 %v650_v49  ;;  %v894_v27 = vmov 0.0  }
  0x1b   :  { %436 = vmatpush.bf16.msra.mxu3 %v783_v3 }
  0x1d   :  { %262 = vmatpush.bf16.msra.mxu1 %v638_v54  ;;  %v788_v54 = vld [vmem:[%s1227_s10 + $0x8] sm:$0xff] }
  0x1e   :  { %142 = vmatpush.bf16.msra.mxu0 %v755_v28  ;;  %276 = vmatpush.bf16.msra.mxu2 %v642_v56 }
  0x1f   :  { %437 = vmatpush.bf16.msra.mxu3 %v782_v6 }
  0x20   :  { %328 = vperm.xlu1 %803, %v305_v12  }
  0x21   :  { %143 = vmatmul.bf16.vlgmr.msra.gmra.mxu0 %v66_v31  ;;  %263 = vmatpush.bf16.msra.mxu1 %v630_v61 }
  0x22   :  { %277 = vmatpush.bf16.msra.mxu2 %v634_v63  ;;  %520 = vmatpush.bf16.msrb.mxu0 %v794_v34 }
  0x23   :  { %438 = vmatpush.bf16.msra.mxu3 %v781_v9 }
  0x26   :  { %521 = vmatpush.bf16.msrb.mxu0 %v793_v35 }
  0x27   :  { %439 = vmatpush.bf16.msra.mxu3 %v780_v11 }
  0x2a   :  { %522 = vmatpush.bf16.msrb.mxu0 %v792_v37 }
  0x2b   :  { %440 = vmatpush.bf16.msra.mxu3 %v779_v15 }
  0x2e   :  { %441 = vmatmul.bf16.vlgmr.msra.gmra.mxu3 %v364_v20  ;;  %523 = vmatpush.bf16.msrb.mxu0 %v791_v39 }
  0x32   :  { %524 = vmatpush.bf16.msrb.mxu0 %v790_v44 }
  0x36   :  { %525 = vmatpush.bf16.msrb.mxu0 %v789_v47 }
  0x3a   :  { %526 = vmatpush.bf16.msrb.mxu0 %v788_v54 }
  0x3e   :  { %527 = vmatpush.bf16.msrb.mxu0 %v787_v58 }
  0x74   :  { %v54_v13 = vpop.permute.xlu0 %53 }
  0x75   :  { %vm58_vm4 = vcmp.lt.s32.totalorder %v49_v21, %v54_v13 }
  0x76   :  { %v593_v28 = vsel %vm58_vm4, 1.0, %v894_v27 }
  0x7d   :  { %v57_v23 = vpop.permute.xlu0 %56 }
  0x7e   :  { %vm59_vm5 = vcmp.lt.s32.totalorder %v49_v21, %v57_v23 }
  0x7f   :  { %v1146_v30 = vsel %vm59_vm5, 1.0, %v894_v27 }
  0x8a   :  { %v323_v40 = vpop.permute.xlu1 %322 }
  0x8b   :  { %v325_v51 = vperm.slane %v323_v40, 0 }
  0x8d   :  { %vm337_vm6 = vweird.f32 %v325_v51  ;;  %v343_v23 = vand.u32 2147483648, %v325_v51 }
  0x92   :  { %v329_v52 = vpop.permute.xlu1 %328 }
  0x93   :  { %v1173_v55 = vperm.slane %v329_v52, 0 }
  0x95   :  { %vm352_vm9 = vweird.f32 %v1173_v55 }
  0x9e   :  { %v144_v18 = vpop.f32.mrf.mxu0 }
  0x9f   :  { %v145_v22 = vadd.f32 %v806_v19, %v144_v18 }
  0xa1   :  { %v149_v25 = vmax.f32 %v145_v22, 0.0  ;;  %v341_v22 = vand.u32 2147483647, %v325_v51 }
  0xa3   :  { %v151_v31 = vmul.f32 %v593_v28, %v149_v25  ;;  %vm342_vm12 = vcmp.eq.f32.partialorder %v341_v22, 8.507059e+37 }
  0xa6   :  { %v146_v24 = vpop.f32.mrf.mxu0 }
  0xa7   :  { %v147_v26 = vadd.f32 %v806_v19, %v146_v24 }
  0xa9   :  { %v150_v29 = vmax.f32 %v147_v26, 0.0  ;;  %v807_v26 = vld [vmem:[%s1226_s9] ss:$0 sm:$0xff]  ;;  %s895_s9 = smov [#allocation4]  }
  0xaa   :  { %s557_s1 = sshll.u32 %s895_s9, 4  ;;  %s558_s1 = int_to_ptr.vmem [resolvable:$true] %s557_s1 }
  0xab   :  { %v152_v32 = vmul.f32 %v1146_v30, %v150_v29 }
  0xad   :  { %v153_v33 = vpack.c.bf16 %v152_v32, %v151_v31  ;;  %v356_v31 = vand.u32 2147483647, %v1173_v55 }
  0xaf   :  { %264 = vmatmul.bf16.vlgmr.msra.gmra.mxu1 %v153_v33  ;;  %278 = vmatmul.bf16.vlgmr.msra.gmra.mxu2 %v153_v33  ;;  %v344_v33 = vor.u32 1.1754944e-38, %v343_v23  ;;  %vm357_vm13 = vcmp.eq.f32.partialorder %v356_v31, 8.507059e+37 }
  0xb1   :  { %v442_v12 = vpop.f32.mrf.mxu3 }
  0xb2   :  { %v443_v37 = vadd.f32 %v807_v26, %v442_v12 }
  0xb9   :  { %v444_v35 = vpop.f32.mrf.mxu3 }
 0x12c   :  { %v265_v41 = vpop.f32.mrf.mxu1 }
 0x12d   :  { %v266_v42 = vadd.f32 %v265_v41, %v172_v38 }
 0x12f   :  { %536 = vst [vmem:[#allocation4] sm:$0xff] %v266_v42 }
 0x132   :  { %v279_v45 = vpop.f32.mrf.mxu2 }
 0x133   :  { %v280_v46 = vadd.f32 %v279_v45, %v173_v43  ;;  %v447_v45 = vmax.f32 %v443_v37, 0.0 }
 0x134   :  { %v267_v48 = vpop.f32.mrf.mxu1 }
 0x135   :  { %v286_v49 = vmul.f32 0.5, %v280_v46  ;;  %538 = vst [vmem:[#allocation6] sm:$0xff] %v280_v46  ;;  %v268_v50 = vadd.f32 %v267_v48, %v172_v38 }
 0x137   :  { %v288_v53 = vmul.f32 1.442695, %v286_v49  ;;  %537 = vst [vmem:[#allocation4 + $0x8] sm:$0xff] %v268_v50 }
 0x138   :  { %565 = dma.vmem_to_hbm [thread:$0]  %s558_s1, 256, %s560_s5, [#allocation5], %s896_s8, %s896_s8, %s897_s21  }
 0x139   :  { %809 = vpow2.f32 %v288_v53  ;;  %v808_v53 = vld [vmem:[%s1228_s11] ss:$0 sm:$0xff] }
 0x13a   :  { %811 = vrcp.f32 %v325_v51  ;;  %v281_v56 = vpop.f32.mrf.mxu2 }
 0x13b   :  { %v282_v57 = vadd.f32 %v281_v56, %v173_v43  ;;  %813 = vrcp.f32 %v1173_v55 }
 0x13d   :  { %v287_v60 = vmul.f32 0.5, %v282_v57  ;;  %539 = vst [vmem:[#allocation6 + $0x8] sm:$0xff] %v282_v57 }
 0x13e   :  { %578 = dma.vmem_to_hbm [thread:$0]  %s571_s23, 256, %s573_s26, [#allocation5], %s896_s8, %s896_s8, %s897_s21  }
 0x13f   :  { %v810_v61 = vpop.eup %809  ;;  %v290_v62 = vmul.f32 1.442695, %v287_v60 }
 0x140   :  { %v812_v63 = vpop.eup %811  ;;  %v292_v0 = vmul.f32 %v810_v61, %v284_v59 }
 0x141   :  { %815 = vpow2.f32 %v290_v62  ;;  %v814_v2 = vpop.eup %813  ;;  %v333_v3 = vmul.f32 %v812_v63, %v325_v51  ;;  %vm338_vm7 = vweird.f32 %v812_v63 }
 0x142   :  { %v294_v1 = vadd.f32 %v292_v0, %v266_v42  ;;  %v348_v6 = vmul.f32 %v814_v2, %v1173_v55  ;;  %vm1187_vm8 = vmor %vm337_vm6, %vm338_vm7  ;;  %vm353_vm10 = vweird.f32 %v814_v2  ;;  %v445_v42 = vadd.f32 %v807_v26, %v444_v35 }
 0x143   :  { %v334_v9 = vsub.f32 1.0, %v333_v3  ;;  %vm1199_vm11 = vmor %vm352_vm9, %vm353_vm10 }
 0x144   :  { %v306_v4 = vmul.f32 %v593_v28, %v294_v1  ;;  %v349_v13 = vsub.f32 1.0, %v348_v6  ;;  %v358_v28 = vand.u32 2147483648, %v1173_v55  ;;  %v448_v49 = vmax.f32 %v445_v42, 0.0 }
 0x145   :  { %v335_v16 = vmul.f32 %v812_v63, %v334_v9 }
 0x146   :  { %v308_v7 = vrot.slane %v306_v4, 4  ;;  %v350_v20 = vmul.f32 %v814_v2, %v349_v13  ;;  %v359_v39 = vor.u32 1.1754944e-38, %v358_v28 }
 0x147   :  { %v816_v8 = vpop.eup %815  ;;  %v336_v21 = vadd.f32 %v812_v63, %v335_v16 }
 0x148   :  { %v293_v10 = vmul.f32 %v816_v8, %v285_v5  ;;  %v309_v11 = vadd.f32 %v308_v7, %v306_v4 }
 0x149   :  { %v340_v32 = vsel %vm1187_vm8, %v812_v63, %v336_v21 }
 0x14a   :  { %v295_v14 = vadd.f32 %v293_v10, %v268_v50  ;;  %v310_v15 = vrot.slane %v309_v11, 2  ;;  %v345_v43 = vsel %vm342_vm12, %v344_v33, %v340_v32 }
 0x14c   :  { %v311_v17 = vadd.f32 %v310_v15, %v309_v11  ;;  %v307_v18 = vmul.f32 %v1146_v30, %v295_v14  ;;  %v351_v30 = vadd.f32 %v814_v2, %v350_v20 }
 0x14e   :  { %v314_v19 = vrot.slane %v307_v18, 4  ;;  %v312_v24 = vrot.slane %v311_v17, 1  ;;  %v355_v41 = vsel %vm1199_vm11, %v814_v2, %v351_v30 }
 0x14f   :  { %v360_v47 = vsel %vm357_vm13, %v359_v39, %v355_v41 }
 0x150   :  { %v315_v27 = vadd.f32 %v314_v19, %v307_v18  ;;  %v313_v36 = vadd.f32 %v312_v24, %v311_v17 }
 0x152   :  { %v316_v29 = vrot.slane %v315_v27, 2  ;;  %v346_v44 = vmul.f32 %v345_v43, %v313_v36 }
 0x154   :  { %v317_v38 = vadd.f32 %v316_v29, %v315_v27  ;;  %v449_v50 = vadd.f32 %v447_v45, %v346_v44 }
 0x156   :  { %v318_v40 = vrot.slane %v317_v38, 1 }
 0x158   :  { %v319_v46 = vadd.f32 %v318_v40, %v317_v38 }
 0x15a   :  { %v361_v48 = vmul.f32 %v360_v47, %v319_v46 }
 0x15c   :  { %v450_v51 = vadd.f32 %v448_v49, %v361_v48 }
 0x15e   :  { %v451_v52 = vpack.c.bf16 %v450_v51, %v449_v50 }
 0x160   :  { %528 = vmatmul.bf16.vlgmr.msrb.gmra.mxu0 %v451_v52 }
 0x1dd   :  { %v529_v54 = vpop.f32.mrf.mxu0 }
 0x1de   :  { %v530_v55 = vadd.f32 %v808_v53, %v529_v54 }
 0x1e0   :  { %534 = vst [vmem:[#allocation2] sm:$0xff] %v530_v55 }
 0x1e5   :  { %v531_v56 = vpop.f32.mrf.mxu0 }
 0x1e6   :  { %v532_v57 = vadd.f32 %v808_v53, %v531_v56 }
 0x1e8   :  { %535 = vst [vmem:[#allocation2 + $0x8] sm:$0xff] %v532_v57 }
 0x1e9   :  { %552 = dma.vmem_to_hbm [thread:$0]  %s545_s0, 256, %s547_s29, [#allocation3], %s896_s8, %s896_s8, %s897_s21  }
 0x1ea   :  { %889 = dma.done.wait [#allocation3], 256  }
 0x1eb   :  { %890 = vsyncadd [#allocation3], 4294967040 }
 0x1ec   :  { %891 = dma.done.wait [#allocation5], 512  }
 0x1ed   :  { %892 = vsyncadd [#allocation5], 4294966784 }
 0x1ee   :  { %591 = vsyncpa [#allocation3], 1 }
 0x1ef   :  { %592 = vsyncpa [#allocation5], 1 }

</bundles_post_ra>
